<compile_context>
chip_gen: v7x
topology: tpu7x:2x2x1
jax: 0.10.0
libtpu: 0.0.40
codegen_flags: <defaults>
</compile_context>

<pallas_src>
import functools

import jax
import jax.numpy as jnp
from jax.experimental import pallas as pl
from jax.experimental.pallas import tpu as pltpu


def _round_up(x, n):
    return ((x + n - 1) // n) * n


def _cdiv(a, b):
    return -(-a // b)


@functools.partial(jax.jit, static_argnames=("row_tile",))
def node_shape_embedding(node_inds, shape_vals, embed_table, lin_w, lin_b,
                         *, row_tile=2048):
    """node_inds: (...,) int, shape_vals: (..., n_shape_vals) float."""
    lead_shape = node_inds.shape
    assert shape_vals.shape[:-1] == lead_shape

    n_labels, op_embed = embed_table.shape
    shape_embed, n_vals = lin_w.shape              # torch Linear weight: (E_sh, V)
    assert shape_vals.shape[-1] == n_vals
    out_embed = op_embed + shape_embed
    f32 = jnp.float32

    # ---- lane-packing factor: k logical rows per 128-lane output row --------
    if out_embed < 128 and 128 % out_embed == 0:
        k = 128 // out_embed
    else:
        k = 1            # out_embed >= 128 (already lane-dense) or odd width

    l_pad = _round_up(n_labels, 8)       # one-hot width per logical row
    kin = 2 + n_vals                     # [idx, 1.0 (bias), shape_vals...]
    KL, KI, KE = k * l_pad, k * kin, k * out_embed

    m = 1
    for d in lead_shape:
        m *= d
    m_p = _cdiv(m, k)                    # packed rows

    # ---- tiling --------------------------------------------------------------
    P_MAX = 128                                    # packed rows per inner chunk
    row_tile_p = _round_up(max(row_tile // k, 1), P_MAX)
    if m_p > row_tile_p:
        # Big M: large tile; ragged last block is clamped by the Pallas
        # pipeline (no padded activation copy, no output slice when k | m).
        tm_p, P = row_tile_p, P_MAX
        m_p_alloc = m_p
    else:
        # Small M: one grid step; pad exactly to the (tiny) tile.
        tm_p = _round_up(m_p, 8)
        P = min(P_MAX, tm_p)
        tm_p = _round_up(tm_p, P)
        m_p_alloc = tm_p
    n_chunks = tm_p // P
    grid = (_cdiv(m_p_alloc, tm_p),)
    m_alloc = m_p_alloc * k

    # ---- packed activations: ONE (m_p_alloc, KI) array; reshapes are free ---
    x = jnp.concatenate(
        [node_inds.reshape(m, 1).astype(f32),       # exact for labels < 2^24
         jnp.ones((m, 1), f32),                     # bias column
         shape_vals.reshape(m, n_vals).astype(f32)], axis=-1)      # (m, kin)
    if m_alloc > m:                                 # < k rows for the big-M path
        x = jnp.concatenate([x, jnp.zeros((m_alloc - m, kin), f32)], axis=0)
    x = x.reshape(m_p_alloc, KI)                    # contiguous -> free reshape

    # ---- constant slabs (block-diagonal => packed matmuls, no in-kernel concat)
    tslab = jnp.zeros((l_pad, out_embed), f32).at[:n_labels, :op_embed].set(
        embed_table.astype(f32))                    # [table | 0]
    lslab = jnp.zeros((kin, out_embed), f32)
    lslab = lslab.at[1, op_embed:].set(lin_b.astype(f32))            # bias row
    lslab = lslab.at[2:2 + n_vals, op_embed:].set(lin_w.T.astype(f32))
    gsel = jnp.zeros((kin, l_pad), f32).at[0, :].set(1.0)   # idx -> lane bcast
    eye_k = jnp.eye(k, dtype=f32)
    wslab = jnp.concatenate(
        [jnp.kron(eye_k, tslab), jnp.kron(eye_k, lslab)], axis=0)    # (KL+KI, KE)
    sslab = jnp.concatenate(
        [jnp.kron(eye_k, gsel),
         jnp.tile(jnp.arange(l_pad, dtype=f32), k)[None, :]], axis=0)  # (KI+1, KL)

    # ---- kernel --------------------------------------------------------------
    def kernel(x_ref, w_ref, s_ref, o_ref):
        # Constants loaded once per grid step (hoisted out of the chunk loop).
        tbd = w_ref[0:KL, :]               # blockdiag [table | 0]        (KL, KE)
        lbd = w_ref[KL:KL + KI, :]         # blockdiag [0; bias; W^T; 0]  (KI, KE)
        gsl = s_ref[0:KI, :]               # idx -> per-group lane bcast  (KI, KL)
        lane_c = s_ref[KI:KI + 1, :]       # label id per lane            (1, KL)

        def body(c, carry):
            r0 = pl.multiple_of(c * P, P)
            xv = x_ref[pl.ds(r0, P), :]                               # (P, KI)
            idx_b = jnp.dot(xv, gsl, preferred_element_type=f32)      # (P, KL)
            onehot = (jnp.abs(idx_b - lane_c) < 0.5).astype(f32)      # exact 0/1
            acc = jnp.dot(onehot, tbd, preferred_element_type=f32)    # gather
            acc = acc + jnp.dot(xv, lbd, preferred_element_type=f32)  # linear+bias
            o_ref[pl.ds(r0, P), :] = acc             # full-lane-width store
            return carry

        jax.lax.fori_loop(0, n_chunks, body, 0, unroll=True)

    out = pl.pallas_call(
        kernel,
        out_shape=jax.ShapeDtypeStruct((m_p_alloc, KE), f32),
        grid_spec=pltpu.PrefetchScalarGridSpec(
            num_scalar_prefetch=0,
            grid=grid,
            in_specs=[
                pl.BlockSpec((tm_p, KI), lambda i: (i, 0)),    # packed activations
                pl.BlockSpec(wslab.shape, lambda i: (0, 0)),   # resident weights
                pl.BlockSpec(sslab.shape, lambda i: (0, 0)),   # resident selectors
            ],
            out_specs=pl.BlockSpec((tm_p, KE), lambda i: (i, 0)),
        ),
        # Working set is < 1 MiB at these sizes; re-derive tm_p / set
        # vmem_limit_bytes only if out_embed grows large on v7x (64 MiB VMEM).
        compiler_params=pltpu.CompilerParams(
            dimension_semantics=("parallel",)),
    )(x, wslab, sslab)

    out = out.reshape(m_alloc, out_embed)            # free (contiguous) reshape
    if m_alloc > m:
        out = out[:m]                                # only if a tail pad existed
    return out.reshape(*lead_shape, out_embed)


def _reference(node_inds, shape_vals, embed_table, lin_w, lin_b):
    op_emb = embed_table[node_inds]
    sh_emb = shape_vals @ lin_w.T + lin_b
    return jnp.concatenate([op_emb, sh_emb], axis=-1)


if __name__ == "__main__":
    # Module hyper-params (small, consistent with the forward)
    n_unique_labels = 10
    out_embed_size = 32
    shape_embed_size = 8
    n_shape_vals = 2
    op_embed_size = out_embed_size - shape_embed_size

    # Deterministic parameter init (synthetic; mirrors shapes of torch layers)
    key = jax.random.PRNGKey(0)
    k_tab, k_w, k_b, k_idx, k_sv = jax.random.split(key, 5)
    embed_table = jax.random.normal(k_tab, (n_unique_labels, op_embed_size),
                                    dtype=jnp.float32)
    bound = 1.0 / (n_shape_vals ** 0.5)
    lin_w = jax.random.uniform(k_w, (shape_embed_size, n_shape_vals),
                               minval=-bound, maxval=bound, dtype=jnp.float32)
    lin_b = jax.random.uniform(k_b, (shape_embed_size,),
                               minval=-bound, maxval=bound, dtype=jnp.float32)

    # Inputs: batch=2, seq=8 nodes
    batch, seq = 2, 8
    node_inds = jax.random.randint(k_idx, (batch, seq), 0, n_unique_labels,
                                   dtype=jnp.int32)
    shape_vals = jax.random.normal(k_sv, (batch, seq, n_shape_vals),
                                   dtype=jnp.float32)

    out = node_shape_embedding(node_inds, shape_vals, embed_table, lin_w, lin_b)
    out = jax.block_until_ready(out)

    ref = _reference(node_inds, shape_vals, embed_table, lin_w, lin_b)
    assert out.shape == (batch, seq, out_embed_size)
    assert jnp.allclose(out, ref, atol=1e-5, rtol=1e-5)

    # Larger, non-divisible M exercises the tail-pad / packed-reshape path.
    k_idx2, k_sv2 = jax.random.split(k_sv)
    ni2 = jax.random.randint(k_idx2, (3, 111), 0, n_unique_labels,
                             dtype=jnp.int32)
    sv2 = jax.random.normal(k_sv2, (3, 111, n_shape_vals), dtype=jnp.float32)
    out2 = jax.block_until_ready(
        node_shape_embedding(ni2, sv2, embed_table, lin_w, lin_b))
    ref2 = _reference(ni2, sv2, embed_table, lin_w, lin_b)
    assert jnp.allclose(out2, ref2, atol=1e-5, rtol=1e-5)

    print("KERNEL_OK")
</pallas_src>

<mosaic_0001>
module attributes {stable_mosaic.version = 11 : i64} {
  func.func @kernel(%arg0: i32, %arg1: memref<8x16xf32, #tpu.memory_space<vmem>>, %arg2: memref<80x128xf32, #tpu.memory_space<vmem>>, %arg3: memref<17x64xf32, #tpu.memory_space<vmem>>, %arg4: memref<8x128xf32, #tpu.memory_space<vmem>>) attributes {dimension_semantics = [#tpu.dimension_semantics<parallel>], iteration_bounds = array<i64: 1>, scalar_prefetch = 0 : i64, scratch_operands = 0 : i64, tpu.core_type = #tpu.core_type<tc>, window_params = [{transform_indices = @transform_0, window_bounds = array<i64: 8, 16>}, {pipeline_mode = #tpu.pipeline_mode<synchronous>, transform_indices = @transform_1, window_bounds = array<i64: 80, 128>}, {pipeline_mode = #tpu.pipeline_mode<synchronous>, transform_indices = @transform_2, window_bounds = array<i64: 17, 64>}, {transform_indices = @transform_3, window_bounds = array<i64: 8, 128>}]} {
    %c0 = arith.constant 0 : index
    %c0_0 = arith.constant 0 : index
    %0 = vector.load %arg2[%c0, %c0_0] : memref<80x128xf32, #tpu.memory_space<vmem>>, vector<64x128xf32>
    %c64 = arith.constant 64 : index
    %c0_1 = arith.constant 0 : index
    %1 = vector.load %arg2[%c64, %c0_1] : memref<80x128xf32, #tpu.memory_space<vmem>>, vector<16x128xf32>
    %c0_2 = arith.constant 0 : index
    %c0_3 = arith.constant 0 : index
    %2 = vector.load %arg3[%c0_2, %c0_3] : memref<17x64xf32, #tpu.memory_space<vmem>>, vector<16x64xf32>
    %c16 = arith.constant 16 : index
    %c0_4 = arith.constant 0 : index
    %3 = vector.load %arg3[%c16, %c0_4] : memref<17x64xf32, #tpu.memory_space<vmem>>, vector<1x64xf32>
    %c0_i32 = arith.constant 0 : i32
    %c8_i32 = arith.constant 8 : i32
    %4 = arith.muli %c0_i32, %c8_i32 : i32
    %5 = tpu.assume_multiple %4, 8 : i32
    %6 = arith.index_cast %5 : i32 to index
    %c0_5 = arith.constant 0 : index
    %7 = vector.load %arg1[%6, %c0_5] : memref<8x16xf32, #tpu.memory_space<vmem>>, vector<8x16xf32>
    %cst = arith.constant dense<0.000000e+00> : vector<8x64xf32>
    %8 = tpu.matmul %7, %2, %cst {dimension_numbers = #tpu.dot_dimension_numbers<[1], [0], [0], [1], [0, 0, 1, 1], [], []>} : vector<8x16xf32>, vector<16x64xf32>, vector<8x64xf32> -> vector<8x64xf32>
    %9 = vector.broadcast %3 : vector<1x64xf32> to vector<8x64xf32>
    %10 = arith.subf %8, %9 : vector<8x64xf32>
    %11 = math.absf %10 : vector<8x64xf32>
    %cst_6 = arith.constant 5.000000e-01 : f32
    %12 = vector.broadcast %cst_6 : f32 to vector<8x64xf32>
    %13 = arith.cmpf olt, %11, %12 : vector<8x64xf32>
    %14 = arith.extui %13 : vector<8x64xi1> to vector<8x64xi32>
    %15 = arith.sitofp %14 : vector<8x64xi32> to vector<8x64xf32>
    %cst_7 = arith.constant dense<0.000000e+00> : vector<8x128xf32>
    %16 = tpu.matmul %15, %0, %cst_7 {dimension_numbers = #tpu.dot_dimension_numbers<[1], [0], [0], [1], [0, 0, 1, 1], [], []>} : vector<8x64xf32>, vector<64x128xf32>, vector<8x128xf32> -> vector<8x128xf32>
    %cst_8 = arith.constant dense<0.000000e+00> : vector<8x128xf32>
    %17 = tpu.matmul %7, %1, %cst_8 {dimension_numbers = #tpu.dot_dimension_numbers<[1], [0], [0], [1], [0, 0, 1, 1], [], []>} : vector<8x16xf32>, vector<16x128xf32>, vector<8x128xf32> -> vector<8x128xf32>
    %18 = arith.addf %16, %17 : vector<8x128xf32>
    %19 = arith.index_cast %5 : i32 to index
    %c0_9 = arith.constant 0 : index
    %20 = vector.load %arg4[%19, %c0_9] : memref<8x128xf32, #tpu.memory_space<vmem>>, vector<8x128xf32>
    tpu.vector_store %arg4[%19, %c0_9], %18 {strides = array<i32>} : memref<8x128xf32, #tpu.memory_space<vmem>>, vector<8x128xf32>,
    %c1_i32 = arith.constant 1 : i32
    return
  }
  func.func @transform_0(%arg0: i32) -> (i32, i32) {
    %c0_i32 = arith.constant 0 : i32
    %c0_i32_0 = arith.constant 0 : i32
    return %arg0, %c0_i32 : i32, i32
  }
  func.func @transform_1(%arg0: i32) -> (i32, i32) {
    %c0_i32 = arith.constant 0 : i32
    %c0_i32_0 = arith.constant 0 : i32
    %c0_i32_1 = arith.constant 0 : i32
    return %c0_i32, %c0_i32_0 : i32, i32
  }
  func.func @transform_2(%arg0: i32) -> (i32, i32) {
    %c0_i32 = arith.constant 0 : i32
    %c0_i32_0 = arith.constant 0 : i32
    %c0_i32_1 = arith.constant 0 : i32
    return %c0_i32, %c0_i32_0 : i32, i32
  }
  func.func @transform_3(%arg0: i32) -> (i32, i32) {
    %c0_i32 = arith.constant 0 : i32
    %c0_i32_0 = arith.constant 0 : i32
    return %arg0, %c0_i32 : i32, i32
  }
}

</mosaic_0001>

<bundles_post_ra>
// kernel: tile.9
= control target key start
LH: loop header
LB: loop body
LE: loop exit
PB: predicated region body
PF: predicated region fallthrough
CT: control target
= control target key end

     0   :  { %vm7_vm0 = vcmask 130048   ;;  %s37_s8 = smov 16   ;;  %s38_s9 = smov 32   ;;  %vm13_vm1 = vcmask 523648   ;;  %vm19_vm2 = vcmask 392448   ;;  %vm25_vm3 = vcmask 261248   ;;  %s55_s0 = inlined_call_operand.vmem [shape: f32[4,16], index: 0, kind: input, shape index: {}]   ;;  %s56_s1 = inlined_call_operand.vmem [shape: f32[1,64], index: 1, kind: output, shape index: {}]  }
   0x1   :  { %v4_v0 = vld [vmem:[%s55_s0] sm:$0xf]  ;;  %s36_s0 = smov 48  }
   0x2   :  { %5 = vst [vmem:[#allocation1] sm:$0xf] %v4_v0 }
   0x9   :  { %v10_v1 = vld [vmem:[#allocation1 + $0x3] sm:$0x1]   ;;  %v22_v2 = vld [vmem:[#allocation1 + $0x1] sm:$0x1]   ;;  %v6_v3 = vld [vmem:[#allocation1] sm:$0x1]  }
   0xa   :  { %11 = vrot.lane.b32.xlu0 %v10_v1, %s36_s0  ;;  %23 = vrot.lane.b32.xlu1 %v22_v2, %s37_s8  ;;  %v16_v4 = vld [vmem:[#allocation1 + $0x2] sm:$0x1]   ;;  %8 = vst.msk [vmem:[#allocation0] sm:$0x1] %vm7_vm0, %v6_v3  }
   0xe   :  { %17 = vrot.lane.b32.xlu0 %v16_v4, %s38_s9 }
  0x7c   :  { %v12_v5 = vpop.permute.xlu0 %11   ;;  %v24_v6 = vpop.permute.xlu1 %23  }
  0x7d   :  { %14 = vst.msk [vmem:[#allocation0] sm:$0x1] %vm13_vm1, %v12_v5  }
  0x80   :  { %v18_v7 = vpop.permute.xlu0 %17  }
  0x81   :  { %20 = vst.msk [vmem:[#allocation0] sm:$0x1] %vm19_vm2, %v18_v7  }
  0x82   :  { %26 = vst.msk [vmem:[#allocation0] sm:$0x1] %vm25_vm3, %v24_v6  }
  0x89   :  { %v30_v8 = vld [vmem:[#allocation0] sm:$0x1] }
  0x8a   :  { %32 = vst [vmem:[%s56_s1] sm:$0x1] %v30_v8 }

// kernel: node_shape_embedding.1
= control target key start
LH: loop header
LB: loop body
LE: loop exit
PB: predicated region body
PF: predicated region fallthrough
CT: control target
= control target key end

     0   :  { %v335_v0 = vmov 0.0|0.0   ;;  %vm336_vm0 = vmmov 0   ;;  %v337_v3 = vmov 0.0   ;;  %vm28_vm1 = vcmask 130048   ;;  %s408_s2 = inlined_call_operand.vmem [shape: f32[17,64], index: 2, kind: input, shape index: {}]   ;;  %s409_s1 = inlined_call_operand.vmem [shape: f32[80,128], index: 1, kind: input, shape index: {}]   ;;  %s410_s0 = inlined_call_operand.vmem [shape: f32[8,16], index: 0, kind: input, shape index: {}]   ;;  %s411_s3 = inlined_call_operand.vmem [shape: f32[8,128], index: 3, kind: output, shape index: {}]  }
   0x1   :  { %313 = vmatprep.subr.bf16.mxu0 %v335_v0  ;;  %v24_v1 = vld [vmem:[%s408_s2] sm:$0xff]  ;;  %v25_v2 = vld [vmem:[%s408_s2 + $0x8] sm:$0xff]  ;;  %284 = vmatprep.mubr.msk.f32.mxu0 %vm336_vm0, %v337_v3  ;;  %v16_v7 = vld [vmem:[%s409_s1 + $0x10] sm:$0xff]  ;;  %vm181_vm2 = vcmask 523264  }
   0x2   :  { %v314_v4 = vpack.c.bf16 %v25_v2, %v24_v1  ;;  %319 = vmatprep.subr.bf16.mxu1 %v335_v0  ;;  %v14_v5 = vld [vmem:[%s409_s1] sm:$0xff]  ;;  %v15_v6 = vld [vmem:[%s409_s1 + $0x8] sm:$0xff]  ;;  %310 = vmatprep.mubr.msk.f32.mxu1 %vm336_vm0, %v337_v3  ;;  %v17_v9 = vld [vmem:[%s409_s1 + $0x18] sm:$0xff] }
   0x3   :  { %v320_v8 = vpack.c.bf16 %v15_v6, %v14_v5  ;;  %v27_v10 = vld [vmem:[%s410_s0] sm:$0xff]  ;;  %v323_v11 = vpack.c.bf16 %v17_v9, %v16_v7  ;;  %v19_v13 = vld [vmem:[%s409_s1 + $0x28] sm:$0xff]  ;;  %v20_v18 = vld [vmem:[%s409_s1 + $0x30] sm:$0xff] }
   0x4   :  { %315 = vmatpush3.bf16.msra.mxu0 %v314_v4  ;;  %v18_v12 = vld [vmem:[%s409_s1 + $0x20] sm:$0xff]  ;;  %v23_v16 = vld [vmem:[%s409_s1 + $0x48] sm:$0xff]  ;;  %v21_v19 = vld [vmem:[%s409_s1 + $0x38] sm:$0xff] }
   0x5   :  { %321 = vmatpush3.bf16.msra.mxu1 %v320_v8  ;;  %316 = vmatprep.subr.bf16.mxu0 %v335_v0  ;;  %v326_v14 = vpack.c.bf16 %v19_v13, %v18_v12  ;;  %v22_v15 = vld [vmem:[%s409_s1 + $0x40] sm:$0xff]  ;;  %v329_v20 = vpack.c.bf16 %v21_v19, %v20_v18  ;;  %v261_v21 = vld [vmem:[%s408_s2 + $0x10] ss:$0 sm:$0xff] }
   0x6   :  { %322 = vmatprep.subr.bf16.mxu1 %v335_v0  ;;  %v317_v17 = vpack.c.bf16 %v23_v16, %v22_v15 }
   0x7   :  { %285 = vmatmul.mubr.msk.f32.vlgmr.msra.gmra.mrb[0].mxu0 %vm28_vm1, %v27_v10 }
   0x8   :  { %291 = vmatprep.mubr.msk.f32.mxu0 %vm336_vm0, %v337_v3  ;;  %318 = vmatpush3.bf16.msra.mxu0 %v317_v17 }
   0x9   :  { %324 = vmatpush3.bf16.msra.mxu1 %v323_v11 }
   0xa   :  { %325 = vmatprep.subr.bf16.mxu1 %v335_v0 }
   0xb   :  { %292 = vmatmul.mubr.msk.f32.vlgmr.msra.gmra.mrb[2].mxu0 %vm28_vm1, %v27_v10 }
   0xd   :  { %327 = vmatpush3.bf16.msra.mxu1 %v326_v14 }
   0xe   :  { %328 = vmatprep.subr.bf16.mxu1 %v335_v0 }
  0x11   :  { %330 = vmatpush3.bf16.msra.mxu1 %v329_v20 }
  0xda   :  { %v98_v22 = vpop.f32.mrb[0].mxu0 }
  0xdb   :  { %v106_v23 = vsub.f32 %v98_v22, %v261_v21  ;;  %v286_v24 = vpop.f32.mrb[1].mxu0 }
  0xdd   :  { %v107_v25 = vand.u32 2147483647, %v106_v23 }
  0xde   :  { %v177_v27 = vpop.f32.mrb[2].mxu0 }
  0xdf   :  { %vm108_vm3 = vcmp.lt.f32.partialorder %v107_v25, 0.5  ;;  %v293_v28 = vpop.f32.mrb[3].mxu0 }
  0xe0   :  { %v262_v26 = vsel %vm108_vm3, 1.0, %v337_v3 }
  0xe1   :  { %311 = vmatmul.mubr.msk.f32.vlgmr.msra.gmra.mrb[0].mxu1 %vm181_vm2, %v262_v26 }
 0x1b4   :  { %v251_v29 = vpop.f32.mrb[0].mxu1 }
 0x1b5   :  { %v252_v30 = vadd.f32 %v251_v29, %v177_v27  ;;  %v312_v31 = vpop.f32.mrb[1].mxu1 }
 0x1b7   :  { %255 = vst [vmem:[%s411_s3] sm:$0xff] %v252_v30 }

</bundles_post_ra>
